<compile_context>
chip_gen: v7x
topology: tpu7x:2x2x1
jax: 0.10.0
libtpu: 0.0.40
codegen_flags: <defaults>
</compile_context>

<pallas_src>
import functools
import math

import jax
import jax.numpy as jnp
from jax.experimental import pallas as pl
from jax.experimental.pallas import tpu as pltpu


def _tokenizer_kernel(x_ref, w_ref, b_ref, o_ref):
    # x_ref: (TM, G*K)   G fused patches per row (lane-dense, G*K % 128 == 0)
    # w_ref: (G*K, G*E)  block-diagonal kron(I_G, W^T) — VMEM-resident
    # b_ref: (1,  G*E)   bias tiled G times — VMEM-resident
    # o_ref: (TM, G*E)   SiLU(x @ w + b); compute/accumulate in f32,
    #                    narrow only at the final store.
    x = x_ref[...].astype(jnp.float32)
    acc = jnp.dot(x, w_ref[...], preferred_element_type=jnp.float32)
    acc = acc + b_ref[...]
    o_ref[...] = (acc * jax.nn.sigmoid(acc)).astype(o_ref.dtype)  # SiLU


def prepare_tokenizer_params(weight, bias, *, patch_size, in_channel):
    """One-time parameter prep (keep OUT of the per-step hot path).

    weight: (E, K) PyTorch nn.Linear layout, bias: (E,).
    Returns (w_big, b_big, group) where
      w_big = kron(I_G, weight.T)  of shape (G*K, G*E)
      b_big = tile(bias, G)        of shape (1, G*E)
    G = lcm(K, 128) // K is chosen so G*K is the minimal multiple of 128;
    it is never reduced — shrinking G would break the lane-density invariant
    (GK % 128 == 0) that makes the output stores unmasked.  For very large E
    the right knob is a smaller block_rows in tokenizer_forward, not G.
    """
    K = patch_size * in_channel
    E = weight.shape[0]
    G = math.lcm(K, 128) // K

    w_kE = jnp.asarray(weight, dtype=jnp.float32).T                 # (K, E)
    w_big = jnp.kron(jnp.eye(G, dtype=w_kE.dtype), w_kE)            # (G*K, G*E)
    b_big = jnp.tile(jnp.asarray(bias, dtype=jnp.float32), G).reshape(1, G * E)
    return w_big, b_big, G


@functools.partial(
    jax.jit, static_argnames=("patch_size", "group", "block_rows", "out_dtype"))
def tokenizer_forward(x, w_big, b_big, *, patch_size, group, block_rows=8192,
                      out_dtype=None):
    """x: (B, S, D). Returns (B, patch_num, E) = SiLU(Linear(patches))."""
    B, S, D = x.shape
    assert S % patch_size == 0, "Sequence length must be divisible by patch size."
    patch_num = S // patch_size
    K = patch_size * D
    M = B * patch_num
    G = group
    GK, GE = w_big.shape
    assert GK == G * K, "Prepared weight does not match patch_size * D."
    assert GK % 128 == 0, "Grouped K must be lane-dense (multiple of 128)."
    E = GE // G
    if out_dtype is None:
        out_dtype = x.dtype

    # ---- Host-side layout: pure row-major reshapes; pad only when M % G != 0.
    x_flat = x.reshape(M, K)
    pad_rows = (-M) % G                       # <= G-1, usually 0
    if pad_rows:
        x_flat = jnp.pad(x_flat, ((0, pad_rows), (0, 0)))
    M_pad = M + pad_rows
    Mg = M_pad // G                           # grouped row count
    x_g = x_flat.reshape(Mg, GK)              # free bitcast when pad_rows == 0

    # ---- Tile-size selection.
    # Sublane multiple: 8 for f32, 16 for bf16, 32 for 8-bit I/O.
    itemsize = min(jnp.dtype(x.dtype).itemsize, jnp.dtype(out_dtype).itemsize)
    sub = max(8, 32 // max(1, itemsize))

    tm = min(block_rows, Mg)
    if tm == Mg and Mg >= 2 * sub:
        # Keep >= 2 grid steps so the "parallel" M axis feeds both v7x TCs
        # (no effect on single-TC v5e/v6e).
        half = -(-Mg // 2)                    # ceil(Mg / 2)
        tm = -(-half // sub) * sub            # round up to sublane multiple
    elif tm < Mg:
        tm = max(sub, (tm // sub) * sub)      # round down to sublane multiple
    # else: tm == Mg (full-extent block) — always a legal block shape.

    grid = (pl.cdiv(Mg, tm),)                 # partial last block: masked writeback

    # Advisory cost for XLA's scheduler — actual (grouped/padded) traffic.
    in_bytes = Mg * GK * jnp.dtype(x.dtype).itemsize
    out_bytes = Mg * GE * jnp.dtype(out_dtype).itemsize
    w_bytes = GK * GE * jnp.dtype(w_big.dtype).itemsize
    b_bytes = GE * jnp.dtype(b_big.dtype).itemsize
    cost = pl.CostEstimate(
        flops=2 * Mg * GK * GE + 4 * Mg * GE,
        transcendentals=Mg * GE,
        bytes_accessed=in_bytes + out_bytes + w_bytes + b_bytes,
    )

    out_g = pl.pallas_call(
        _tokenizer_kernel,
        out_shape=jax.ShapeDtypeStruct((Mg, GE), out_dtype),
        grid_spec=pltpu.PrefetchScalarGridSpec(
            num_scalar_prefetch=0,
            grid=grid,
            in_specs=[
                pl.BlockSpec((tm, GK), lambda i: (i, 0)),   # streamed input tiles
                pl.BlockSpec((GK, GE), lambda i: (0, 0)),   # weight: VMEM-resident
                pl.BlockSpec((1, GE), lambda i: (0, 0)),    # bias: VMEM-resident
            ],
            out_specs=pl.BlockSpec((tm, GE), lambda i: (i, 0)),
        ),
        compiler_params=pltpu.CompilerParams(
            dimension_semantics=("parallel",),              # 2x on v7x dual-TC
            vmem_limit_bytes=32 * 1024 * 1024,              # safe on 64 MiB v7x
        ),
        cost_estimate=cost,
    )(x_g, w_big, b_big)

    # Ungroup (pure reshape, row order preserved); slice only if we padded.
    out = out_g.reshape(M_pad, E)
    if pad_rows:
        out = out[:M]                         # padded rows = SiLU(bias), dropped
    return out.reshape(B, patch_num, E)


def _reference(x, weight, bias, patch_size):
    B, S, D = x.shape
    patch_num = S // patch_size
    seq = x.astype(jnp.float32).reshape(B, patch_num, patch_size * D)
    enc = jnp.einsum("bpk,ek->bpe", seq, weight) + bias
    return enc * jax.nn.sigmoid(enc)


if __name__ == "__main__":
    # Module config (small): in_channel=4, patch_size=4, embedding_dim=32
    in_channel = 4
    patch_size = 4
    embedding_dim = 32

    key = jax.random.PRNGKey(0)
    kx1, kx2, kx3, kw, kb = jax.random.split(key, 5)

    # Deterministic nn.Linear-style init: U(-1/sqrt(fan_in), 1/sqrt(fan_in))
    fan_in = patch_size * in_channel
    bound = 1.0 / math.sqrt(fan_in)
    weight = jax.random.uniform(kw, (embedding_dim, fan_in), jnp.float32,
                                minval=-bound, maxval=bound)
    bias = jax.random.uniform(kb, (embedding_dim,), jnp.float32,
                              minval=-bound, maxval=bound)

    # One-time parameter prep (kept outside the jitted forward).
    w_big, b_big, group = prepare_tokenizer_params(
        weight, bias, patch_size=patch_size, in_channel=in_channel)

    def run_and_check(x, *, atol, rtol, **fwd_kwargs):
        out = tokenizer_forward(x, w_big, b_big, patch_size=patch_size,
                                group=group, **fwd_kwargs)
        out = jax.block_until_ready(out)
        ref = _reference(x, weight, bias, patch_size)
        B, S, _ = x.shape
        assert out.shape == (B, S // patch_size, embedding_dim)
        assert jnp.allclose(out.astype(jnp.float32), ref, atol=atol, rtol=rtol)
        return out

    # 1) Base case: M % G == 0 -> no pad, no slice (free reshapes), f32 I/O.
    x1 = jax.random.normal(kx1, (2, 16, in_channel), dtype=jnp.float32)
    run_and_check(x1, atol=1e-5, rtol=1e-5)

    # 2) Pad path: M % G != 0 (pads <= G-1 rows, slices them back off).
    x2 = jax.random.normal(kx2, (3, 20, in_channel), dtype=jnp.float32)
    run_and_check(x2, atol=1e-5, rtol=1e-5)

    # 3) Multi-step grid (>= 2 steps for v7x dual-TC) with a partial last
    #    block along M (masked writeback).
    x3 = jax.random.normal(kx3, (2, 320, in_channel), dtype=jnp.float32)
    run_and_check(x3, atol=1e-5, rtol=1e-5)

    # 4) Narrow-output path: bf16 store, f32 compute (bandwidth saving).
    run_and_check(x1, atol=2e-2, rtol=2e-2, out_dtype=jnp.bfloat16)

    print("KERNEL_OK")
</pallas_src>

<mosaic_0001>
module attributes {stable_mosaic.version = 11 : i64} {
  func.func @_tokenizer_kernel(%arg0: i32, %arg1: memref<1x128xf32, #tpu.memory_space<vmem>>, %arg2: memref<128x256xf32, #tpu.memory_space<vmem>>, %arg3: memref<1x256xf32, #tpu.memory_space<vmem>>, %arg4: memref<1x256xf32, #tpu.memory_space<vmem>>) attributes {dimension_semantics = [#tpu.dimension_semantics<parallel>], iteration_bounds = array<i64: 1>, scalar_prefetch = 0 : i64, scratch_operands = 0 : i64, tpu.core_type = #tpu.core_type<tc>, window_params = [{transform_indices = @transform_0, window_bounds = array<i64: 1, 128>}, {pipeline_mode = #tpu.pipeline_mode<synchronous>, transform_indices = @transform_1, window_bounds = array<i64: 128, 256>}, {pipeline_mode = #tpu.pipeline_mode<synchronous>, transform_indices = @transform_2, window_bounds = array<i64: 1, 256>}, {transform_indices = @transform_3, window_bounds = array<i64: 1, 256>}]} {
    %c0 = arith.constant 0 : index
    %c0_0 = arith.constant 0 : index
    %0 = vector.load %arg1[%c0, %c0_0] : memref<1x128xf32, #tpu.memory_space<vmem>>, vector<1x128xf32>
    %c0_1 = arith.constant 0 : index
    %c0_2 = arith.constant 0 : index
    %1 = vector.load %arg2[%c0_1, %c0_2] : memref<128x256xf32, #tpu.memory_space<vmem>>, vector<128x256xf32>
    %cst = arith.constant dense<0.000000e+00> : vector<1x256xf32>
    %2 = tpu.matmul %0, %1, %cst {dimension_numbers = #tpu.dot_dimension_numbers<[1], [0], [0], [1], [0, 0, 1, 1], [], []>} : vector<1x128xf32>, vector<128x256xf32>, vector<1x256xf32> -> vector<1x256xf32>
    %c0_3 = arith.constant 0 : index
    %c0_4 = arith.constant 0 : index
    %3 = vector.load %arg3[%c0_3, %c0_4] : memref<1x256xf32, #tpu.memory_space<vmem>>, vector<1x256xf32>
    %4 = arith.addf %2, %3 : vector<1x256xf32>
    %5 = arith.negf %4 : vector<1x256xf32>
    %6 = math.exp %5 : vector<1x256xf32>
    %cst_5 = arith.constant 1.000000e+00 : f32
    %7 = vector.broadcast %cst_5 : f32 to vector<1x256xf32>
    %8 = arith.addf %7, %6 : vector<1x256xf32>
    %9 = arith.divf %7, %8 : vector<1x256xf32>
    %10 = arith.mulf %4, %9 : vector<1x256xf32>
    %c0_6 = arith.constant 0 : index
    %c0_7 = arith.constant 0 : index
    %11 = vector.load %arg4[%c0_6, %c0_7] : memref<1x256xf32, #tpu.memory_space<vmem>>, vector<1x256xf32>
    tpu.vector_store %arg4[%c0_6, %c0_7], %10 {strides = array<i32>} : memref<1x256xf32, #tpu.memory_space<vmem>>, vector<1x256xf32>,
    return
  }
  func.func @transform_0(%arg0: i32) -> (i32, i32) {
    %c0_i32 = arith.constant 0 : i32
    %c0_i32_0 = arith.constant 0 : i32
    return %arg0, %c0_i32 : i32, i32
  }
  func.func @transform_1(%arg0: i32) -> (i32, i32) {
    %c0_i32 = arith.constant 0 : i32
    %c0_i32_0 = arith.constant 0 : i32
    %c0_i32_1 = arith.constant 0 : i32
    return %c0_i32, %c0_i32_0 : i32, i32
  }
  func.func @transform_2(%arg0: i32) -> (i32, i32) {
    %c0_i32 = arith.constant 0 : i32
    %c0_i32_0 = arith.constant 0 : i32
    %c0_i32_1 = arith.constant 0 : i32
    return %c0_i32, %c0_i32_0 : i32, i32
  }
  func.func @transform_3(%arg0: i32) -> (i32, i32) {
    %c0_i32 = arith.constant 0 : i32
    %c0_i32_0 = arith.constant 0 : i32
    return %arg0, %c0_i32 : i32, i32
  }
}

</mosaic_0001>

<bundles_post_ra>
// kernel: tokenizer_forward.1
= control target key start
LH: loop header
LB: loop body
LE: loop exit
PB: predicated region body
PF: predicated region fallthrough
CT: control target
= control target key end

     0   :  { %8 = vsyncpa [#allocation3], 0  ;;  %s257_s12 = smov [#allocation2]   ;;  %s303_s0 = inlined_call_operand.vmem [shape: f32[1,128], index: 0, kind: input, shape index: {}]   ;;  %s304_s1 = inlined_call_operand.hbm [shape: f32[128,256], index: 1, kind: input, shape index: {}]   ;;  %s305_s2 = inlined_call_operand.vmem [shape: f32[1,256], index: 2, kind: input, shape index: {}]   ;;  %s306_s3 = inlined_call_operand.vmem [shape: f32[1,256], index: 3, kind: output, shape index: {}]  }
   0x1   :  { %s16_s13 = sshll.u32 %s257_s12, 4  ;;  %s233_s16 = scalar_lea.hbm %s304_s1, 4096  ;;  %s17_s13 = int_to_ptr.vmem [resolvable:$true] %s16_s13 }
   0x2   :  { %p234_p0 = scmp.ne.s32.totalorder %s304_s1, %s233_s16  ;;  %p237_p1 = scmp.lt.u32.totalorder %s233_s16, %s304_s1 }
   0x4   :  { %p239_p2 = pnand %p237_p1, %p234_p0 }
   0x6   :  { %242 = shalt.err (!%p239_p2)
}
   0x7   :  { %s243_s21 = scalar_lea.vmem %s17_s13, 4096  ;;  %p248_p4 = scmp.lt.s32.totalorder %s17_s13, %s17_s13 }
   0x8   :  { %p244_p3 = scmp.ne.s32.totalorder %s17_s13, %s243_s21  ;;  %p249_p5 = scmp.lt.s32.totalorder %s243_s21, %s243_s21 }
   0xa   :  { %p250_p6 = por %p249_p5, %p248_p4 }
   0xc   :  { %p251_p7 = pnand %p250_p6, %p244_p3 }
   0xe   :  { %254 = shalt.err (!%p251_p7)
}
   0xf   :  { %s258_s22 = smov 256   ;;  %s259_s23 = smov 16  }
  0x10   :  { %22 = dma.hbm_to_vmem [thread:$0]  %s304_s1, 4096, %s17_s13, [#allocation3], %s258_s22, %s258_s22, %s259_s23  }
  0x11   :  { %255 = dma.done.wait [#allocation3], 4096  }
  0x12   :  { %256 = vsyncadd [#allocation3], 4294963200  ;;  %v260_v0 = vmov 0.0   ;;  %v30_v1 = vld [vmem:[#allocation2 + $0x8] sm:$0xff]  ;;  %v32_v2 = vld [vmem:[#allocation2 + $0x18] sm:$0xff]  ;;  %v63_v50 = vlaneseq }
  0x13   :  { %137 = vmatprep.mubr.f32.mxu0 %v260_v0  ;;  %v29_v3 = vld [vmem:[#allocation2] sm:$0xff]  ;;  %v188_v4 = vpack.c.bf16 %v32_v2, %v30_v1  ;;  %v31_v5 = vld [vmem:[#allocation2 + $0x10] sm:$0xff]  ;;  %v34_v6 = vld [vmem:[#allocation2 + $0x28] sm:$0xff] }
  0x14   :  { %v36_v7 = vld [vmem:[#allocation2 + $0x38] sm:$0xff]  ;;  %v190_v8 = vpack.c.bf16 %v31_v5, %v29_v3  ;;  %v33_v10 = vld [vmem:[#allocation2 + $0x20] sm:$0xff]  ;;  %v35_v11 = vld [vmem:[#allocation2 + $0x30] sm:$0xff]  ;;  %v64_v51 = vshrl.u32 %v63_v50, 7  ;;  %v261_v3 = vmov 1966171168  }
  0x15   :  { %v192_v9 = vpack.c.bf16 %v36_v7, %v34_v6  ;;  %v38_v12 = vld [vmem:[#allocation2 + $0x48] sm:$0xff]  ;;  %189 = vmatprep.subr.bf16.mxu0 %v188_v4  ;;  %v40_v13 = vld [vmem:[#allocation2 + $0x58] sm:$0xff]  ;;  %v194_v14 = vpack.c.bf16 %v35_v11, %v33_v10  ;;  %v37_v16 = vld [vmem:[#allocation2 + $0x40] sm:$0xff]  ;;  %v162_v4 = vunpack.c.l.s4 %v261_v3  ;;  %vm178_vm0 = vcmp.lt.s32.totalorder %v63_v50, 256 }
  0x16   :  { %191 = vmatpush1.bf16.msra.mxu0 %v190_v8  ;;  %v196_v15 = vpack.c.bf16 %v40_v13, %v38_v12  ;;  %v39_v17 = vld [vmem:[#allocation2 + $0x50] sm:$0xff]  ;;  %v42_v18 = vld [vmem:[#allocation2 + $0x68] sm:$0xff]  ;;  %v44_v19 = vld [vmem:[#allocation2 + $0x78] sm:$0xff]  ;;  %v65_v52 = vsub.s32 0, %v64_v51  ;;  %v69_v54 = vsub.s32 1, %v64_v51 }
  0x17   :  { %193 = vmatprep.subr.bf16.mxu0 %v192_v9  ;;  %v198_v20 = vpack.c.bf16 %v39_v17, %v37_v16  ;;  %v200_v21 = vpack.c.bf16 %v44_v19, %v42_v18  ;;  %v41_v22 = vld [vmem:[#allocation2 + $0x60] sm:$0xff]  ;;  %v43_v23 = vld [vmem:[#allocation2 + $0x70] sm:$0xff]  ;;  %v46_v24 = vld [vmem:[#allocation2 + $0x88] sm:$0xff]  ;;  %v163_v5 = vunpack.c.0.s8 %v162_v4 }
  0x18   :  { %v48_v25 = vld [vmem:[#allocation2 + $0x98] sm:$0xff]  ;;  %v202_v26 = vpack.c.bf16 %v43_v23, %v41_v22  ;;  %v45_v28 = vld [vmem:[#allocation2 + $0x80] sm:$0xff]  ;;  %v47_v29 = vld [vmem:[#allocation2 + $0x90] sm:$0xff] }
  0x19   :  { %v204_v27 = vpack.c.bf16 %v48_v25, %v46_v24  ;;  %v50_v30 = vld [vmem:[#allocation2 + $0xa8] sm:$0xff]  ;;  %v52_v31 = vld [vmem:[#allocation2 + $0xb8] sm:$0xff]  ;;  %v206_v32 = vpack.c.bf16 %v47_v29, %v45_v28  ;;  %v49_v34 = vld [vmem:[#allocation2 + $0xa0] sm:$0xff]  ;;  %v166_v10 = vsub.s32 %v163_v5, %v64_v51 }
  0x1a   :  { %195 = vmatpush1.bf16.msra.mxu0 %v194_v14  ;;  %v208_v33 = vpack.c.bf16 %v52_v31, %v50_v30  ;;  %v51_v35 = vld [vmem:[#allocation2 + $0xb0] sm:$0xff]  ;;  %v54_v36 = vld [vmem:[#allocation2 + $0xc8] sm:$0xff]  ;;  %v56_v37 = vld [vmem:[#allocation2 + $0xd8] sm:$0xff] }
  0x1b   :  { %197 = vmatprep.subr.bf16.mxu0 %v196_v15  ;;  %v210_v38 = vpack.c.bf16 %v51_v35, %v49_v34  ;;  %v212_v39 = vpack.c.bf16 %v56_v37, %v54_v36  ;;  %v53_v40 = vld [vmem:[#allocation2 + $0xc0] sm:$0xff]  ;;  %v55_v41 = vld [vmem:[#allocation2 + $0xd0] sm:$0xff]  ;;  %v58_v42 = vld [vmem:[#allocation2 + $0xe8] sm:$0xff] }
  0x1c   :  { %v60_v43 = vld [vmem:[#allocation2 + $0xf8] sm:$0xff]  ;;  %v214_v44 = vpack.c.bf16 %v55_v41, %v53_v40  ;;  %v57_v46 = vld [vmem:[#allocation2 + $0xe0] sm:$0xff]  ;;  %v59_v47 = vld [vmem:[#allocation2 + $0xf0] sm:$0xff] }
  0x1d   :  { %v216_v45 = vpack.c.bf16 %v60_v43, %v58_v42  ;;  %v218_v48 = vpack.c.bf16 %v59_v47, %v57_v46  ;;  %v28_v49 = vld [vmem:[%s303_s0] sm:$0x1] }
  0x1e   :  { %199 = vmatpush1.bf16.msra.mxu0 %v198_v20  ;;  %v61_v53 = vld [vmem:[%s305_s2] sm:$0x3] }
  0x1f   :  { %201 = vmatprep.subr.bf16.mxu0 %v200_v21  ;;  %v66_v55 = vrot.slane %v61_v53, %v65_v52  ;;  %v70_v56 = vrot.slane %v61_v53, %v69_v54 }
  0x22   :  { %203 = vmatpush1.bf16.msra.mxu0 %v202_v26 }
  0x23   :  { %205 = vmatprep.subr.bf16.mxu0 %v204_v27 }
  0x26   :  { %207 = vmatpush1.bf16.msra.mxu0 %v206_v32 }
  0x27   :  { %209 = vmatprep.subr.bf16.mxu0 %v208_v33 }
  0x2a   :  { %211 = vmatpush1.bf16.msra.mxu0 %v210_v38 }
  0x2b   :  { %213 = vmatprep.subr.bf16.mxu0 %v212_v39 }
  0x2e   :  { %215 = vmatpush1.bf16.msra.mxu0 %v214_v44 }
  0x2f   :  { %217 = vmatprep.subr.bf16.mxu0 %v216_v45 }
  0x32   :  { %219 = vmatpush1.bf16.msra.mxu0 %v218_v48 }
  0x35   :  { %138 = vmatmul.mubr.f32.vlgmr.msra.gmra.mrb[0].mxu0 %v28_v49 }
 0x108   :  { %v139_v57 = vpop.f32.mrb[0].mxu0 }
 0x109   :  { %v140_v58 = vadd.f32 %v139_v57, %v66_v55  ;;  %v141_v59 = vpop.f32.mrb[1].mxu0 }
 0x10a   :  { %v142_v60 = vadd.f32 %v141_v59, %v70_v56 }
 0x10b   :  { %v186_v61 = vmul.f32 -1.442695, %v140_v58 }
 0x10c   :  { %v187_v62 = vmul.f32 -1.442695, %v142_v60 }
 0x10d   :  { %225 = vpow2.f32 %v186_v61 }
 0x10e   :  { %227 = vpow2.f32 %v187_v62 }
 0x117   :  { %v226_v63 = vpop.eup %225 }
 0x118   :  { %v228_v0 = vpop.eup %227  ;;  %v150_v1 = vadd.f32 1.0, %v226_v63 }
 0x119   :  { %v151_v2 = vadd.f32 1.0, %v228_v0 }
 0x11a   :  { %229 = vrcp.f32 %v150_v1 }
 0x11b   :  { %231 = vrcp.f32 %v151_v2 }
 0x124   :  { %v230_v6 = vpop.eup %229 }
 0x125   :  { %v232_v7 = vpop.eup %231  ;;  %v156_v8 = vmul.f32 %v230_v6, %v140_v58 }
 0x126   :  { %v157_v9 = vmul.f32 %v232_v7, %v142_v60 }
 0x128   :  { %v160_v11 = vcombine.low %v156_v8, %v157_v9 }
 0x12a   :  { %v167_v12 = vrot.slane %v160_v11, %v166_v10 }
 0x12c   :  { %v174_v13 = vrot.slane %v167_v12, %v166_v10 }
 0x12e   :  { %180 = vst.msk [vmem:[%s306_s3] sm:$0x3] %vm178_vm0, %v174_v13 }
 0x12f   :  { %185 = vsyncpa [#allocation3], 1 }

</bundles_post_ra>
